<compile_context>
chip_gen: v5e
topology: v5e:2x2
jax: 0.10.0
libtpu: 0.0.40
codegen_flags: <defaults>
</compile_context>

<pallas_src>
import functools

import jax
import jax.numpy as jnp
from jax.experimental import pallas as pl
from jax.experimental.pallas import tpu as pltpu


def _dssn_rmsnorm_kernel(x_ref, w_ref, s_ref, o_ref, *, eps, depth_scale,
                         hidden):
    # x_ref: (block_rows, H) tile of the input
    # w_ref: (1, H) weight (broadcast over rows)
    # s_ref: (2,) SMEM scalars: [alpha, beta]

    # Pass 1: sum of squares / variance (float32 accumulation).
    xf = x_ref[...].astype(jnp.float32)
    var = jnp.sum(xf * xf, axis=-1, keepdims=True) * jnp.float32(1.0 / hidden)
    inv = jax.lax.rsqrt(var + jnp.float32(eps))

    alpha = s_ref[0]
    beta = s_ref[1]
    # Fold depth_scale * alpha into the (1, H) weight once per tile.
    w_scaled = w_ref[...].astype(jnp.float32) * (jnp.float32(depth_scale) * alpha)

    # Pass 2: re-load the tile from VMEM (instead of keeping a full f32
    # temporary alive across the reduction), normalize and apply affine.
    xf2 = x_ref[...].astype(jnp.float32)
    o_ref[...] = (w_scaled * (xf2 * inv) + beta).astype(o_ref.dtype)


def _vmem_cap_bytes():
    """Generation-aware scoped-VMEM cap with headroom for compiler scratch."""
    try:
        cap = int(pltpu.get_tpu_info().vmem_capacity_bytes)
    except Exception:  # pragma: no cover - conservative fallback
        cap = 64 * 1024 * 1024
    # Leave ~25% headroom; never ask for more than 96 MiB.
    return min(int(cap * 3 // 4), 96 * 1024 * 1024)


def _pick_block_rows(n_rows, hidden, dtype, *,
                     target_bytes=8 * 1024 * 1024,
                     min_tile_bytes=1 * 1024 * 1024,
                     min_steps=8):
    """Row-tile size: ~8 MiB tiles, but keep >= min_steps grid iterations
    (so both v7x TensorCores get several steps and double-buffering overlaps)
    as long as tiles stay >= ~1 MiB."""
    itemsize = jnp.dtype(dtype).itemsize
    row_mult = 16 if itemsize <= 2 else 8
    row_bytes = max(1, hidden * itemsize)

    rows = max(row_mult, target_bytes // row_bytes)
    rows = max(row_mult, (rows // row_mult) * row_mult)
    rows = min(rows, n_rows)

    steps = -(-n_rows // rows)  # cdiv
    while steps < min_steps and rows > row_mult:
        new_rows = max(row_mult, ((rows // 2) // row_mult) * row_mult)
        if new_rows == rows:
            break
        # Only keep shrinking below ~1 MiB tiles if we do not yet have
        # at least 2 steps (pipelining / megacore minimum).
        if new_rows * row_bytes < min_tile_bytes and steps >= 2:
            break
        rows = new_rows
        steps = -(-n_rows // rows)
    return rows


def dssn_rmsnorm(x, weight, alpha, beta, *, layer_number, num_layers,
                 eps=1e-5, block_rows=None):
    """Pallas implementation of DSSN_RMSNorm.forward (compatibility_mode=False)."""
    depth_scale = 1.0 + layer_number / num_layers * 0.3

    orig_shape = x.shape
    H = orig_shape[-1]
    x2 = x.reshape(-1, H)
    N = x2.shape[0]
    w2 = weight.reshape(1, H)

    itemsize = jnp.dtype(x.dtype).itemsize
    row_mult = 16 if itemsize <= 2 else 8
    cap = _vmem_cap_bytes()

    if block_rows is None:
        block_rows = _pick_block_rows(N, H, x.dtype)
    block_rows = max(1, min(block_rows, N))

    # Make sure double-buffered input + output tiles fit under the cap.
    def _tile_need(r):
        return 4 * r * H * itemsize + (2 << 20)
    while block_rows > row_mult and _tile_need(block_rows) > cap:
        block_rows = max(row_mult, ((block_rows // 2) // row_mult) * row_mult)

    vmem_limit = int(min(cap, max(_tile_need(block_rows), 16 * 1024 * 1024)))

    scalars = jnp.stack(
        [jnp.asarray(alpha, jnp.float32), jnp.asarray(beta, jnp.float32)])

    kernel = functools.partial(
        _dssn_rmsnorm_kernel, eps=eps, depth_scale=depth_scale, hidden=H)

    out = pl.pallas_call(
        kernel,
        grid=(pl.cdiv(N, block_rows),),
        in_specs=[
            pl.BlockSpec((block_rows, H), lambda i: (i, 0)),   # x tile
            pl.BlockSpec((1, H), lambda i: (0, 0)),            # weight
            pl.BlockSpec(memory_space=pltpu.SMEM),             # [alpha, beta]
        ],
        out_specs=pl.BlockSpec((block_rows, H), lambda i: (i, 0)),
        out_shape=jax.ShapeDtypeStruct((N, H), x.dtype),
        compiler_params=pltpu.CompilerParams(
            dimension_semantics=("parallel",),
            vmem_limit_bytes=vmem_limit),
    )(x2, w2, scalars)

    return out.reshape(orig_shape)


def _reference(x, weight, alpha, beta, *, layer_number, num_layers, eps=1e-5):
    depth_scale = 1.0 + layer_number / num_layers * 0.3
    xf = x.astype(jnp.float32)
    var = jnp.mean(xf * xf, axis=-1, keepdims=True)
    normed = xf * jax.lax.rsqrt(var + eps)
    out = weight.astype(jnp.float32) * normed * depth_scale * alpha + beta
    return out.astype(x.dtype)


if __name__ == "__main__":
    # Small shapes consistent with the module: (batch=2, seq=8, hidden=32)
    B, S, H = 2, 8, 32
    layer_number, num_layers = 3, 12

    key = jax.random.PRNGKey(0)
    x = jax.random.normal(key, (B, S, H), dtype=jnp.float32)

    # Parameters as initialized in __init__ (deterministic, no checkpoint):
    weight = jnp.ones((H,), dtype=jnp.float32)
    alpha = jnp.asarray(1.0, dtype=jnp.float32)
    beta = jnp.asarray(0.0, dtype=jnp.float32)

    out = dssn_rmsnorm(x, weight, alpha, beta,
                       layer_number=layer_number, num_layers=num_layers,
                       eps=1e-5)
    out = jax.block_until_ready(out)

    ref = _reference(x, weight, alpha, beta,
                     layer_number=layer_number, num_layers=num_layers,
                     eps=1e-5)
    assert out.shape == x.shape and out.dtype == x.dtype
    assert jnp.max(jnp.abs(out - ref)) < 1e-5

    print("KERNEL_OK")
</pallas_src>

<mosaic_0001>
module attributes {stable_mosaic.version = 11 : i64} {
  func.func @_dssn_rmsnorm_kernel(%arg0: i32, %arg1: memref<8x32xf32, #tpu.memory_space<vmem>>, %arg2: memref<1x32xf32, #tpu.memory_space<vmem>>, %arg3: memref<2xf32, #tpu.memory_space<smem>>, %arg4: memref<8x32xf32, #tpu.memory_space<vmem>>) attributes {dimension_semantics = [#tpu.dimension_semantics<parallel>], iteration_bounds = array<i64: 2>, scalar_prefetch = 0 : i64, scratch_operands = 0 : i64, tpu.core_type = #tpu.core_type<tc>, window_params = [{transform_indices = @transform_0, window_bounds = array<i64: 8, 32>}, {pipeline_mode = #tpu.pipeline_mode<synchronous>, transform_indices = @transform_1, window_bounds = array<i64: 1, 32>}, {transform_indices = @transform_2, window_bounds = array<i64: 2>}, {transform_indices = @transform_3, window_bounds = array<i64: 8, 32>}]} {
    %c0 = arith.constant 0 : index
    %c0_0 = arith.constant 0 : index
    %0 = vector.load %arg1[%c0, %c0_0] : memref<8x32xf32, #tpu.memory_space<vmem>>, vector<8x32xf32>
    %1 = arith.mulf %0, %0 : vector<8x32xf32>
    %cst = arith.constant dense<0.000000e+00> : vector<8xf32>
    %2 = vector.multi_reduction <add>, %1, %cst [1] : vector<8x32xf32> to vector<8xf32>
    %3 = vector.shape_cast %2 : vector<8xf32> to vector<8x1xf32>
    %cst_1 = arith.constant 3.125000e-02 : f32
    %4 = vector.broadcast %cst_1 : f32 to vector<8x1xf32>
    %5 = arith.mulf %3, %4 : vector<8x1xf32>
    %cst_2 = arith.constant 9.99999974E-6 : f32
    %6 = vector.broadcast %cst_2 : f32 to vector<8x1xf32>
    %7 = arith.addf %5, %6 : vector<8x1xf32>
    %8 = math.rsqrt %7 : vector<8x1xf32>
    %c0_3 = arith.constant 0 : index
    %9 = memref.load %arg3[%c0_3] : memref<2xf32, #tpu.memory_space<smem>>
    %c1 = arith.constant 1 : index
    %10 = memref.load %arg3[%c1] : memref<2xf32, #tpu.memory_space<smem>>
    %c0_4 = arith.constant 0 : index
    %c0_5 = arith.constant 0 : index
    %11 = vector.load %arg2[%c0_4, %c0_5] : memref<1x32xf32, #tpu.memory_space<vmem>>, vector<1x32xf32>
    %cst_6 = arith.constant 1.075000e+00 : f32
    %12 = arith.mulf %cst_6, %9 : f32
    %13 = vector.broadcast %12 : f32 to vector<1x32xf32>
    %14 = arith.mulf %11, %13 : vector<1x32xf32>
    %c0_7 = arith.constant 0 : index
    %c0_8 = arith.constant 0 : index
    %15 = vector.load %arg1[%c0_7, %c0_8] : memref<8x32xf32, #tpu.memory_space<vmem>>, vector<8x32xf32>
    %16 = vector.broadcast %8 : vector<8x1xf32> to vector<8x32xf32>
    %17 = arith.mulf %15, %16 : vector<8x32xf32>
    %18 = vector.broadcast %14 : vector<1x32xf32> to vector<8x32xf32>
    %19 = arith.mulf %18, %17 : vector<8x32xf32>
    %20 = vector.broadcast %10 : f32 to vector<8x32xf32>
    %21 = arith.addf %19, %20 : vector<8x32xf32>
    %c0_9 = arith.constant 0 : index
    %c0_10 = arith.constant 0 : index
    %22 = vector.load %arg4[%c0_9, %c0_10] : memref<8x32xf32, #tpu.memory_space<vmem>>, vector<8x32xf32>
    tpu.vector_store %arg4[%c0_9, %c0_10], %21 {strides = array<i32>} : memref<8x32xf32, #tpu.memory_space<vmem>>, vector<8x32xf32>,
    return
  }
  func.func @transform_0(%arg0: i32) -> (i32, i32) {
    %c0_i32 = arith.constant 0 : i32
    %c0_i32_0 = arith.constant 0 : i32
    return %arg0, %c0_i32 : i32, i32
  }
  func.func @transform_1(%arg0: i32) -> (i32, i32) {
    %c0_i32 = arith.constant 0 : i32
    %c0_i32_0 = arith.constant 0 : i32
    %c0_i32_1 = arith.constant 0 : i32
    return %c0_i32, %c0_i32_0 : i32, i32
  }
  func.func @transform_2(%arg0: i32) -> i32 {
    %c0_i32 = arith.constant 0 : i32
    %c0_i32_0 = arith.constant 0 : i32
    return %c0_i32 : i32
  }
  func.func @transform_3(%arg0: i32) -> (i32, i32) {
    %c0_i32 = arith.constant 0 : i32
    %c0_i32_0 = arith.constant 0 : i32
    return %arg0, %c0_i32 : i32, i32
  }
}

</mosaic_0001>

<bundles_post_ra>
// kernel: tpu_custom_call.1
= control target key start
LH: loop header
LB: loop body
LE: loop exit
PB: predicated region body
PF: predicated region fallthrough
CT: control target
= control target key end

     0   :  { %8 = vsyncpa [#allocation3], 0  ;;  %s767_s0 = inlined_call_operand.hbm [shape: f32[16,32], index: 0, kind: input, shape index: {}]   ;;  %s768_s1 = inlined_call_operand.hbm [shape: f32[1,32], index: 1, kind: input, shape index: {}]   ;;  %s769_s2 = inlined_call_operand.vmem [shape: f32[2], index: 2, kind: input, shape index: {}]   ;;  %s770_s3 = inlined_call_operand.hbm [shape: f32[16,32], index: 3, kind: output, shape index: {}]  }
   0x1   :  { %10 = vsyncpa [#allocation3 + $0x1], 0 }
   0x2   :  { %11 = vsyncpa [#allocation7], 0 }
   0x3   :  { %12 = vsyncpa [#allocation5], 0 }
   0x4   :  { %13 = vsyncpa [#allocation4], 0 }
   0x5   :  { %15 = vsyncpa [#allocation4 + $0x1], 0  ;;  %s616_s12 = smov 0   ;;  %s618_s13 = smov 0  }
   0x6   :  { %s620_s14 = smov 0   ;;  %s622_s15 = smov 0  }
   0x7 LB: > { %s637_s16 = sadd.s32 4294967295, %s592_s15   ;;  %s357_s17 = sadd.s32 4294967294, %s592_s15   ;;  %s592_s15 = sphi %s622_s15, %s780_s15   ;;  %s588_s14 = sphi %s620_s14, %s779_s14   ;;  %s584_s13 = sphi %s618_s13, %s778_s13   ;;  %s580_s12 = sphi %s616_s12, %s777_s12  }
   0x8   : > { %p41_p0 = scmp.ne.s32.totalorder %s584_s13, %s580_s12  ;;  %p42_p1 = scmp.eq.s32.totalorder %s637_s16, 0 }
   0x9   : > { %p107_p2 = scmp.eq.s32.totalorder %s637_s16, 1  ;;  %p113_p3 = scmp.eq.s32.totalorder %s357_s17, 1 }
   0xa   : > { %p646_p4 = por %p42_p1, %p41_p0  ;;  %p358_p5 = scmp.ge.s32.totalorder %s592_s15, 1 }
   0xb   : > { %p651_p6 = por %p113_p3, %p41_p0  ;;  %p120_p7 = scmp.lt.s32.totalorder %s592_s15, 3 }
   0xc   : > { %s132_s22 = sshll.u32 %s768_s1, 4  ;;  %s594_s24 = smov [#allocation6]   ;;  %s133_s22 = int_to_ptr.hbm [resolvable:$true] %s132_s22 }
   0xd   : > { %p659_p8 = pnand %p358_p5, %p120_p7  ;;  %s134_s25 = sshll.u32 %s594_s24, 4  ;;  %s135_s25 = int_to_ptr.vmem [resolvable:$true] %s134_s25 }
   0xe   : > { %s144_s28 = sshll.u32 %s769_s2, 4  ;;  %s595_s29 = smov [#allocation8]   ;;  %s145_s28 = int_to_ptr.vmem [resolvable:$true] %s144_s28 }
   0xf   : > { %p386_p10 = pneg %p659_p8  ;;  %s672_s30 = sadd.s32 1, %s592_s15  }
  0x10   : > { %s28_s4 = sadd.s32 1, %s588_s14  ;;  %s25_s5 = ssub.s32 %s592_s15, %s672_s30 }
  0x11   : > { %p387_p11 = pnand %p386_p10, %p42_p1  ;;  %p35_p12 = scmp.ne.s32.totalorder %s588_s14, %s584_s13 }
  0x12   : > { %p26_p13 = scmp.eq.s32.totalorder %s25_s5, 0  ;;  %p36_p0 = scmp.eq.s32.totalorder %s592_s15, 0 }
  0x13   : > { %389 = dma.hbm_to_vmem [thread:$0]  (!%p387_p11), %s133_s22, 16, %s135_s25, [#allocation7]  }
  0x14   : > { %392 = dma.vmem_to_smem (!%p387_p11), %s145_s28, 16, %s595_s29, [#allocation5]  }
  0x15   : > { %p682_p3 = por %p107_p2, %p35_p12  ;;  %p403_p5 = scmp.lt.s32.totalorder %s592_s15, 2 }
  0x16   : > { %s688_s7 = scalar_select %p26_p13, %s588_s14, %s28_s4  }
  0x17   : > { %p37_p7 = por %p36_p0, %p35_p12  ;;  %s155_s8 = sand.u32 1, %s588_s14  }
  0x18   : > { %s362_s9 = sshll.u32 %s155_s8, 3  ;;  %s363_s10 = sshll.u32 %s592_s15, 3 }
  0x19   : > { %s163_s20 = scalar_lea.hbm %s767_s0, %s363_s10  ;;  %s159_s21 = scalar_lea.vmem [#allocation2], %s362_s9 }
  0x1a   : > { %s167_s22 = sshll.u32 %s159_s21, 4  ;;  %s165_s24 = sshll.u32 %s163_s20, 4  ;;  %s168_s22 = int_to_ptr.vmem [resolvable:$true] %s167_s22  ;;  %s166_s24 = int_to_ptr.hbm [resolvable:$true] %s165_s24 }
  0x1b   : > { %p695_p2 = pnand %p403_p5, %p37_p7  ;;  %s156_s26 = scalar_lea.sflag [#allocation3], %s155_s8 }
  0x1c   : > { %s488_s27 = sshra.s32 %s166_s24, 4  ;;  %s495_s5 = scalar_lea.hbm %s767_s0, 16  ;;  %s489_s27 = int_to_ptr.hbm [resolvable:$true] %s488_s27 }
  0x1d   : > { %s490_s28 = scalar_lea.hbm %s489_s27, 8  ;;  %p492_p11 = pneg %p695_p2 }
  0x1e   : > { %p491_p10 = scmp.ne.s32.totalorder %s489_s27, %s490_s28  ;;  %p496_p0 = scmp.lt.s32.totalorder %s489_s27, %s767_s0 }
  0x1f   : > { %p497_p5 = scmp.lt.s32.totalorder %s495_s5, %s490_s28 }
  0x20   : > { %p493_p12 = pnand %p492_p11, %p491_p10 }
  0x21   : > { %p498_p7 = por %p497_p5, %p496_p0 }
  0x22   : > { %p494_p13 = pneg %p493_p12 }
  0x24   : > { %p499_p9 = pnand %p498_p7, %p494_p13 }
  0x26   : > { %502 = shalt.err (!%p499_p9)
}
  0x27   : > { %396 = dma.hbm_to_vmem [thread:$0]  (!%p695_p2), %s166_s24, 128, %s168_s22, %s156_s26  }
  0x28   : > { %176 = sbr.rel (%p659_p8) target bundleno = 203 (0xcb), region = 32  ;;  %s712_s8 = sand.u32 (!%p659_p8), 1, %s584_s13  }
  0x29   : > { %s365_s11 = sshll.u32 (!%p659_p8), %s712_s8, 3  ;;  %s179_s17 = scalar_lea.sflag (!%p659_p8), [#allocation3], %s712_s8 }
  0x2a   : > { %s182_s20 = scalar_lea.vmem (!%p659_p8), [#allocation2], %s365_s11 }
  0x2d   : > { %563 = dma.done.wait (%p646_p4), %s179_s17, 128  }
  0x2e   : > { %565 = vsyncadd (%p646_p4), %s179_s17, 4294967168 }
  0x2f   : > { %567 = dma.done.wait (%p42_p1), [#allocation7], 16  }
  0x30   : > { %569 = vsyncadd (%p42_p1), [#allocation7], 4294967280 }
  0x31   : > { %571 = dma.done.wait (%p42_p1), [#allocation5], 16  }
  0x32   : > { %573 = vsyncadd (%p42_p1), [#allocation5], 4294967280 }
  0x33   : > { %198 = sfence }
  0x34   : > { %v217_v0 = vld [vmem:[%s182_s20] sm:$0xff]  ;;  %vm219_vm0 = vcmask 261120   ;;  %s235_s18 = sld [smem:[#allocation8]]  ;;  %v237_v9 = vld [vmem:[#allocation6] sm:$0x1]  ;;  %s371_s22 = sshll.u32 %s637_s16, 3 }
  0x35   : > { %v218_v1 = vmul.f32 %v217_v0, %v217_v0  ;;  %s369_s21 = sld [smem:[#allocation8 + $0x1]]  ;;  %s260_s26 = scalar_lea.hbm %s770_s3, %s371_s22 }
  0x36   : > { %s216_s27 = scalar_lea.vmem [#allocation9], %s365_s11  ;;  %s264_s29 = sshll.u32 %s260_s26, 4  ;;  %s265_s29 = int_to_ptr.hbm [resolvable:$true] %s264_s29 }
  0x37   : > { %v220_v2 = vsel %vm219_vm0, %v218_v1, 0.0  ;;  %s262_s28 = sshll.u32 %s216_s27, 4  ;;  %s250_s16 = scalar_lea.sflag [#allocation4], %s712_s8  ;;  %s263_s28 = int_to_ptr.vmem [resolvable:$true] %s262_s28 }
  0x38   : > { %221 = vadd.xlane.f32.xlu0 %v220_v2  ;;  %s532_s4 = sshra.s32 %s265_s29, 4  ;;  %s538_s11 = scalar_lea.hbm %s770_s3, 16  ;;  %s533_s4 = int_to_ptr.hbm [resolvable:$true] %s532_s4 }
  0x39   : > { %s534_s5 = scalar_lea.hbm %s533_s4, 8  ;;  %p539_p9 = scmp.lt.s32.totalorder %s533_s4, %s770_s3 }
  0x3a   : > { %s238_s23 = smul.f32 1.075, %s235_s18  ;;  %p535_p1 = scmp.ne.s32.totalorder %s533_s4, %s534_s5 }
  0x3b   : > { %v246_v18 = vstv %s369_s21  ;;  %p540_p2 = scmp.lt.s32.totalorder %s538_s11, %s534_s5 }
  0x3c   : > { %v239_v10 = vstv %s238_s23  ;;  %p536_p4 = pnand %p535_p1, %p682_p3 }
  0x3d   : > { %v240_v12 = vmul.f32 %v239_v10, %v237_v9  ;;  %p541_p10 = por %p540_p2, %p539_p9 }
  0x3e   : > { %p537_p8 = pneg %p536_p4 }
  0x3f   : > { %v243_v15 = vperm.slane %v240_v12, 0 }
  0x40   : > { %p542_p11 = pnand %p541_p10, %p537_p8 }
  0xab   : > { %v222_v3 = vpop.xlane.xlu0 %221 }
  0xac   : > { %v223_v4 = vmul.f32 0.03125, %v222_v3 }
  0xae   : > { %v224_v5 = vadd.f32 1e-05, %v223_v4 }
  0xb0   : > { %441 = vrsqrt.f32 %v224_v5  ;;  %vm231_vm2 = vweird.f32 %v224_v5 }
  0xb6   : > { %v442_v6 = vpop.eup %441 }
  0xb7   : > { %v226_v7 = vmul.f32 %v442_v6, %v224_v5  ;;  %vm232_vm1 = vweird.f32 %v442_v6 }
  0xb8   : > { %vm233_vm3 = vmor %vm231_vm2, %vm232_vm1 }
  0xb9   : > { %v227_v8 = vmul.f32 %v442_v6, %v226_v7 }
  0xbb   : > { %v228_v11 = vmul.f32 0.5, %v227_v8 }
  0xbd   : > { %v229_v13 = vsub.f32 1.5, %v228_v11 }
  0xbf   : > { %v230_v14 = vmul.f32 %v442_v6, %v229_v13 }
  0xc1   : > { %v234_v16 = vsel %vm233_vm3, %v442_v6, %v230_v14 }
  0xc2   : > { %v241_v17 = vmul.f32 %v234_v16, %v217_v0 }
  0xc4   : > { %v245_v19 = vmul.f32 %v243_v15, %v241_v17 }
  0xc6   : > { %v247_v20 = vadd.f32 %v246_v18, %v245_v19 }
  0xc8   : > { %248 = vst.msk [vmem:[%s216_s27] sm:$0xff] %vm219_vm0, %v247_v20 }
  0xc9   : > { %545 = shalt.err (!%p542_p11)
}
  0xca   : > { %384 = dma.vmem_to_hbm [thread:$0]  (%p682_p3), %s263_s28, 128, %s265_s29, %s250_s16  }
  0xcb PF: > { %s276_s8 = sand.u32 1, %s580_s12   ;;  %p776_p12 = scmp.ge.s32.totalorder %s592_s15, 2 }
  0xcc   : > { %s277_s18 = scalar_lea.sflag [#allocation4], %s276_s8 }
  0xcd   : > { %p398_p13 = pnand %p776_p12, %p651_p6 }
  0xcf   : > { %p399_p0 = pneg %p398_p13 }
  0xd1   : > { %575 = dma.done.wait (%p399_p0), %s277_s18, 128  }
  0xd2   : > { %577 = vsyncadd (%p399_p0), %s277_s18, 4294967168  ;;  %p18_p5 = scmp.ge.s32.totalorder %s672_s30, 4   ;;  %s777_s12 = smov %s584_s13 }
  0xd3   : > { %s778_s13 = smov %s588_s14  ;;  %s779_s14 = smov %s688_s7 }
  0xd4   : > { %s780_s15 = smov %s672_s30  ;;  %20 = sbr.rel (!%p18_p5) target bundleno = 7 (0x7), region = 86 }
  0xd9   :  { %283 = vsyncpa [#allocation3], 1 }
  0xda   :  { %285 = vsyncpa [#allocation3 + $0x1], 1 }
  0xdb   :  { %286 = vsyncpa [#allocation7], 1 }
  0xdc   :  { %287 = vsyncpa [#allocation4], 1 }
  0xdd   :  { %289 = vsyncpa [#allocation4 + $0x1], 1 }
  0xde   :  { %290 = vsyncpa [#allocation5], 1 }
  0xdf   :  { %292 = vsyncpa [#allocation5 + $0x1], 1 }

</bundles_post_ra>
